<compile_context>
chip_gen: v5e
topology: v5e:2x2
jax: 0.10.0
libtpu: 0.0.40
codegen_flags: <defaults>
</compile_context>

<pallas_src>
import functools
import math

import jax
import jax.numpy as jnp
from jax.experimental import pallas as pl
from jax.experimental.pallas import tpu as pltpu


_LOG_CLAMP = math.log(1e-12)             # clamp(p, min=1e-12) expressed in log space
_VMEM_LIMIT_BYTES = 48 * 1024 * 1024     # safe on v5e/v6e (128 MiB) and v7x (64 MiB)
_INPUT_BUFFER_BUDGET = 16 * 1024 * 1024  # 2 inputs x 2 pipeline buffers of the row tile
_MAX_BATCH_TILE = 8192                   # sublane-axis cap for the tiny-d regime
# TODO(synk): for very large d (vocab >~100k) add a second grid axis over d with an
# online-softmax (running max / denom), and for d < 128 pack multiple rows per lane
# group to recover lane utilization; current version uses full-d row blocks.


def _ce_loss_kernel(g_ref, logits_ref, out_ref):
    """One batch tile: writes an (8, d) partial sum of -g * clamped log-softmax."""
    logits = logits_ref[...].astype(jnp.float32)      # (tb, d)
    g = g_ref[...].astype(jnp.float32)                # (tb, d)

    # Numerically stable log-softmax along the logit axis (dim=1).
    m = jnp.max(logits, axis=1, keepdims=True)
    shifted = logits - m
    denom = jnp.sum(jnp.exp(shifted), axis=1, keepdims=True)
    log_p = shifted - jnp.log(denom)
    # torch.clamp(p, min=1e-12)  <=>  clamp log p at log(1e-12); also guards g==0
    # rows against 0 * (-inf).
    log_p = jnp.maximum(log_p, jnp.float32(_LOG_CLAMP))

    loss = -g * log_p                                 # (tb, d)

    tb, d = loss.shape
    # Fold the batch tile onto 8 sublanes with plain vreg adds (no per-step full
    # XLU reduce, no SMEM scalar read-modify-write); the single cross-lane/sublane
    # reduction happens once in the JAX wrapper.
    out_ref[...] = jnp.sum(loss.reshape(tb // 8, 8, d), axis=0)


def _choose_batch_tile(b, d, itemsize):
    """Largest multiple-of-8 row tile whose double-buffered inputs fit the budget."""
    rows = _INPUT_BUFFER_BUDGET // (4 * d * max(itemsize, 1))  # 2 inputs x 2 buffers
    rows = (rows // 8) * 8
    rows = max(8, min(rows, _MAX_BATCH_TILE))
    b_up = ((b + 7) // 8) * 8        # don't tile past the actual (rounded) batch
    return max(8, min(rows, b_up))


@functools.partial(jax.jit, static_argnames=("batch_tile",))
def _ce_loss_call(g, logits, batch_tile):
    b, d = g.shape                   # original (unpadded) batch size
    num_tiles = pl.cdiv(b, batch_tile)
    padded_b = num_tiles * batch_tile
    if padded_b != b:
        # Zero-padded rows contribute exactly 0: g == 0 and the softmax of a zero
        # row is finite, so -g * log(p) == 0 there.
        pad = padded_b - b
        g = jnp.pad(g, ((0, pad), (0, 0)))
        logits = jnp.pad(logits, ((0, pad), (0, 0)))

    partials = pl.pallas_call(
        _ce_loss_kernel,
        out_shape=jax.ShapeDtypeStruct((num_tiles * 8, d), jnp.float32),
        grid_spec=pltpu.PrefetchScalarGridSpec(
            num_scalar_prefetch=0,
            grid=(num_tiles,),
            in_specs=[
                pl.BlockSpec((batch_tile, d), lambda i: (i, 0)),
                pl.BlockSpec((batch_tile, d), lambda i: (i, 0)),
            ],
            out_specs=pl.BlockSpec((8, d), lambda i: (i, 0)),
        ),
        compiler_params=pltpu.CompilerParams(
            # Disjoint per-step output blocks -> batch axis is safely parallel
            # (uses both TensorCores on v7x, harmless on v5e/v6e).
            dimension_semantics=("parallel",),
            vmem_limit_bytes=_VMEM_LIMIT_BYTES,
        ),
    )(g, logits)

    # Single final reduction; mean over the *original* batch size.
    return (jnp.sum(partials) / jnp.float32(b)).astype(jnp.float32)


def my_cross_entropy_loss(g, logits):
    """Pallas equivalent of MyCrossEntropyLoss.forward(g, logits) -> scalar."""
    assert g.shape == logits.shape and g.ndim == 2
    b, d = g.shape
    batch_tile = _choose_batch_tile(b, d, jnp.dtype(logits.dtype).itemsize)
    return _ce_loss_call(g, logits, batch_tile=batch_tile)


def _reference(g, logits):
    p = jax.nn.softmax(logits.astype(jnp.float32), axis=1)
    p = jnp.maximum(p, 1e-12)
    return jnp.mean(jnp.sum(-g.astype(jnp.float32) * jnp.log(p), axis=1))


if __name__ == "__main__":
    key = jax.random.PRNGKey(0)
    k1, k2, k3, k4 = jax.random.split(key, 4)

    # Case 1: small shapes consistent with the module's [b, d] contract.
    b, d = 8, 32
    logits = jax.random.normal(k1, (b, d), dtype=jnp.float32)
    g = jax.nn.softmax(jax.random.normal(k2, (b, d), dtype=jnp.float32), axis=1)
    out = jax.block_until_ready(my_cross_entropy_loss(g, logits))
    ref = _reference(g, logits)
    assert jnp.allclose(out, ref, atol=1e-4, rtol=1e-4), (out, ref)

    # Case 2: non-multiple-of-8 batch (exercises the padding path) and
    # large-magnitude logits that drive some probabilities below the 1e-12 clamp.
    b2, d2 = 50, 384
    logits2 = 40.0 * jax.random.normal(k3, (b2, d2), dtype=jnp.float32)
    g2 = jax.nn.softmax(jax.random.normal(k4, (b2, d2), dtype=jnp.float32), axis=1)
    out2 = jax.block_until_ready(my_cross_entropy_loss(g2, logits2))
    ref2 = _reference(g2, logits2)
    assert jnp.allclose(out2, ref2, atol=1e-4, rtol=1e-4), (out2, ref2)

    print("KERNEL_OK")
</pallas_src>

<mosaic_0001>
module attributes {stable_mosaic.version = 11 : i64} {
  func.func @_ce_loss_kernel(%arg0: i32, %arg1: memref<8x32xf32, #tpu.memory_space<vmem>>, %arg2: memref<8x32xf32, #tpu.memory_space<vmem>>, %arg3: memref<8x32xf32, #tpu.memory_space<vmem>>) attributes {dimension_semantics = [#tpu.dimension_semantics<parallel>], iteration_bounds = array<i64: 1>, scalar_prefetch = 0 : i64, scratch_operands = 0 : i64, tpu.core_type = #tpu.core_type<tc>, window_params = [{transform_indices = @transform_0, window_bounds = array<i64: 8, 32>}, {transform_indices = @transform_1, window_bounds = array<i64: 8, 32>}, {transform_indices = @transform_2, window_bounds = array<i64: 8, 32>}]} {
    %c0 = arith.constant 0 : index
    %c0_0 = arith.constant 0 : index
    %0 = vector.load %arg2[%c0, %c0_0] : memref<8x32xf32, #tpu.memory_space<vmem>>, vector<8x32xf32>
    %c0_1 = arith.constant 0 : index
    %c0_2 = arith.constant 0 : index
    %1 = vector.load %arg1[%c0_1, %c0_2] : memref<8x32xf32, #tpu.memory_space<vmem>>, vector<8x32xf32>
    %cst = arith.constant dense<0xFF800000> : vector<8xf32>
    %2 = vector.multi_reduction <maximumf>, %0, %cst [1] : vector<8x32xf32> to vector<8xf32>
    %3 = vector.shape_cast %2 : vector<8xf32> to vector<8x1xf32>
    %4 = vector.broadcast %3 : vector<8x1xf32> to vector<8x32xf32>
    %5 = arith.subf %0, %4 : vector<8x32xf32>
    %6 = math.exp %5 : vector<8x32xf32>
    %cst_3 = arith.constant dense<0.000000e+00> : vector<8xf32>
    %7 = vector.multi_reduction <add>, %6, %cst_3 [1] : vector<8x32xf32> to vector<8xf32>
    %8 = vector.shape_cast %7 : vector<8xf32> to vector<8x1xf32>
    %9 = math.log %8 : vector<8x1xf32>
    %10 = vector.broadcast %9 : vector<8x1xf32> to vector<8x32xf32>
    %11 = arith.subf %5, %10 : vector<8x32xf32>
    %cst_4 = arith.constant -27.6310215 : f32
    %12 = vector.broadcast %cst_4 : f32 to vector<8x32xf32>
    %13 = arith.maximumf %11, %12 : vector<8x32xf32>
    %cst_5 = arith.constant 0.000000e+00 : f32
    %14 = vector.broadcast %cst_5 : f32 to vector<8x32xf32>
    %15 = arith.subf %14, %1 : vector<8x32xf32>
    %16 = arith.mulf %15, %13 : vector<8x32xf32>
    %17 = vector.shape_cast %16 : vector<8x32xf32> to vector<1x8x32xf32>
    %cst_6 = arith.constant dense<0.000000e+00> : vector<8x32xf32>
    %18 = vector.multi_reduction <add>, %17, %cst_6 [0] : vector<1x8x32xf32> to vector<8x32xf32>
    %c0_7 = arith.constant 0 : index
    %c0_8 = arith.constant 0 : index
    %19 = vector.load %arg3[%c0_7, %c0_8] : memref<8x32xf32, #tpu.memory_space<vmem>>, vector<8x32xf32>
    tpu.vector_store %arg3[%c0_7, %c0_8], %18 {strides = array<i32>} : memref<8x32xf32, #tpu.memory_space<vmem>>, vector<8x32xf32>,
    return
  }
  func.func @transform_0(%arg0: i32) -> (i32, i32) {
    %c0_i32 = arith.constant 0 : i32
    %c0_i32_0 = arith.constant 0 : i32
    return %arg0, %c0_i32 : i32, i32
  }
  func.func @transform_1(%arg0: i32) -> (i32, i32) {
    %c0_i32 = arith.constant 0 : i32
    %c0_i32_0 = arith.constant 0 : i32
    return %arg0, %c0_i32 : i32, i32
  }
  func.func @transform_2(%arg0: i32) -> (i32, i32) {
    %c0_i32 = arith.constant 0 : i32
    %c0_i32_0 = arith.constant 0 : i32
    return %arg0, %c0_i32 : i32, i32
  }
}

</mosaic_0001>

<bundles_post_ra>
// kernel: _ce_loss_call.1
= control target key start
LH: loop header
LB: loop body
LE: loop exit
PB: predicated region body
PF: predicated region fallthrough
CT: control target
= control target key end

     0   :  { %7 = vsyncpa [#allocation3], 0  ;;  %s152_s0 = inlined_call_operand.hbm [shape: f32[8,32], index: 0, kind: input, shape index: {}]   ;;  %s153_s1 = inlined_call_operand.hbm [shape: f32[8,32], index: 1, kind: input, shape index: {}]   ;;  %s154_s2 = inlined_call_operand.vmem [shape: f32[8,32], index: 2, kind: output, shape index: {}]  }
   0x1   :  { %s14_s11 = sshll.u32 %s152_s0, 4  ;;  %s15_s11 = int_to_ptr.hbm [resolvable:$true] %s14_s11 }
   0x2   :  { %8 = vsyncpa [#allocation5], 0  ;;  %s123_s12 = smov [#allocation2]   ;;  %s25_s16 = sshll.u32 %s153_s1, 4  ;;  %s26_s16 = int_to_ptr.hbm [resolvable:$true] %s25_s16 }
   0x3   :  { %s16_s13 = sshll.u32 %s123_s12, 4  ;;  %s124_s17 = smov [#allocation4]   ;;  %s17_s13 = int_to_ptr.vmem [resolvable:$true] %s16_s13 }
   0x4   :  { %19 = dma.hbm_to_vmem [thread:$0]  %s15_s11, 128, %s17_s13, [#allocation3]  }
   0x5   :  { %s27_s18 = sshll.u32 %s124_s17, 4  ;;  %s28_s18 = int_to_ptr.vmem [resolvable:$true] %s27_s18 }
   0x6   :  { %30 = dma.hbm_to_vmem [thread:$0]  %s26_s16, 128, %s28_s18, [#allocation5]  }
   0x7   :  { %119 = dma.done.wait [#allocation3], 128  }
   0x8   :  { %120 = vsyncadd [#allocation3], 4294967168 }
   0x9   :  { %121 = dma.done.wait [#allocation5], 128  }
   0xa   :  { %122 = vsyncadd [#allocation5], 4294967168  ;;  %vm41_vm0 = vcmask 261120   ;;  %v39_v0 = vld [vmem:[#allocation4] sm:$0xff]  ;;  %v40_v9 = vld [vmem:[#allocation2] sm:$0xff] }
   0xb   :  { %v42_v1 = vsel %vm41_vm0, %v39_v0, -inf  ;;  %v55_v11 = vsub.f32 0.0, %v40_v9 }
   0xc   :  { %43 = vmax.xlane.f32.xlu0 %v42_v1 }
  0x7f   :  { %v44_v2 = vpop.xlane.xlu0 %43 }
  0x80   :  { %v45_v3 = vsub.f32 %v39_v0, %v44_v2 }
  0x82   :  { %v46_v4 = vmul.f32 1.442695, %v45_v3 }
  0x84   :  { %67 = vpow2.f32 %v46_v4 }
  0x8a   :  { %v68_v5 = vpop.eup %67 }
  0x8b   :  { %v48_v6 = vsel %vm41_vm0, %v68_v5, 0.0 }
  0x8c   :  { %49 = vadd.xlane.f32.xlu0 %v48_v6 }
  0xff   :  { %v50_v7 = vpop.xlane.xlu0 %49 }
 0x100   :  { %69 = vlog2.f32 %v50_v7 }
 0x106   :  { %v70_v8 = vpop.eup %69 }
 0x107   :  { %v52_v10 = vmul.f32 0.6931472, %v70_v8 }
 0x109   :  { %v53_v12 = vsub.f32 %v45_v3, %v52_v10 }
 0x10b   :  { %v54_v13 = vmax.f32 %v53_v12, -27.631021 }
 0x10d   :  { %v56_v14 = vmul.f32 %v55_v11, %v54_v13 }
 0x10f   :  { %58 = vst.msk [vmem:[%s154_s2] sm:$0xff] %vm41_vm0, %v56_v14 }
 0x110   :  { %63 = vsyncpa [#allocation3], 1 }
 0x111   :  { %64 = vsyncpa [#allocation5], 1 }

</bundles_post_ra>
